<compile_context>
chip_gen: v7x
topology: tpu7x:2x2x1
jax: 0.10.0
libtpu: 0.0.40
codegen_flags: <defaults>
</compile_context>

<pallas_src>
import functools

import jax
import jax.numpy as jnp
from jax import lax
from jax.experimental import pallas as pl
from jax.experimental.pallas import tpu as pltpu

EPS = 1e-5
MAXP = 4                 # largest branch padding (k=9 -> pad 4)
KS = (3, 5, 7, 9)        # SK branch kernel sizes
NTAP = 2 * MAXP + 1      # 9 unique shifted windows cover every branch + shortcut


# ----------------------------------------------------------------------------
# Pallas kernel: one grid step == `bt` batch elements (lane-packed).
# ----------------------------------------------------------------------------
def _block_kernel(x_ref, wbig_ref, wfc_ref, v_ref, o_ref, *,
                  cin, cout, hw, hpw, w, bt):
    """
    x_ref    : [cin, bt*hpw]        padded input slab (compute dtype)
    wbig_ref : [5*cout, NTAP*cin]   fused conv weights [k3; k5; k7; k9; shortcut]
    wfc_ref  : [5*cout, cout]       rows 0:4C attention FC, rows 4C:5C folded 1x1
    v_ref    : [12*cout, 1] f32     [b_big(5C); s2(C); t2(C); b_fc(4C); b_1x1(C)]
    o_ref    : [cout, bt*hw] f32
    """
    n = bt * hw
    cdt = wbig_ref.dtype

    # ---- im2col: the NTAP unique shifted windows, shared by all branches -----
    taps = []
    for t in range(NTAP):
        cols = [x_ref[:, b * hpw + t * w: b * hpw + t * w + hw] for b in range(bt)]
        taps.append(cols[0] if bt == 1 else jnp.concatenate(cols, axis=1))
    x_win = jnp.concatenate(taps, axis=0)                      # [NTAP*cin, n]

    # ---- ONE MXU matmul for the 4 SK branches + the shortcut conv (BN folded)
    big = jnp.dot(wbig_ref[...], x_win, preferred_element_type=jnp.float32)
    big = big + v_ref[0:5 * cout, :]                           # [5*cout, n]

    y1 = big[0 * cout:1 * cout, :]
    y2 = big[1 * cout:2 * cout, :]
    y3 = big[2 * cout:3 * cout, :]
    y4 = big[3 * cout:4 * cout, :]
    sc = big[4 * cout:5 * cout, :]                             # shortcut branch

    # ---- attention: per-sample GAP -> batched FC over `bt` samples -> sigmoid
    y_sum = y1 + y2 + y3 + y4
    gap = jnp.concatenate(
        [jnp.mean(y_sum[:, b * hw:(b + 1) * hw], axis=1, keepdims=True)
         for b in range(bt)], axis=1)                          # [cout, bt]
    logits = jnp.dot(wfc_ref[0:4 * cout, :], gap.astype(cdt),
                     preferred_element_type=jnp.float32)
    attn = jax.nn.sigmoid(logits + v_ref[7 * cout:11 * cout, :])   # [4*cout, bt]

    def widen(a):  # [cout, bt] -> [cout, bt*hw]  (per-sample lane broadcast)
        if bt == 1:
            return jnp.broadcast_to(a, (cout, hw))
        return jnp.concatenate(
            [jnp.broadcast_to(a[:, b:b + 1], (cout, hw)) for b in range(bt)],
            axis=1)

    sk = (y1 * widen(attn[0 * cout:1 * cout, :])
          + y2 * widen(attn[1 * cout:2 * cout, :])
          + y3 * widen(attn[2 * cout:3 * cout, :])
          + y4 * widen(attn[3 * cout:4 * cout, :]))

    # ---- BN -> ReLU -> folded 1x1 conv (+BN); element-wise kept in f32 -------
    r = jnp.maximum(sk * v_ref[5 * cout:6 * cout, :]
                    + v_ref[6 * cout:7 * cout, :], 0.0)
    main = jnp.dot(wfc_ref[4 * cout:5 * cout, :], r.astype(cdt),
                   preferred_element_type=jnp.float32) + v_ref[11 * cout:12 * cout, :]

    o_ref[...] = jnp.maximum(main + sc, 0.0)


# ----------------------------------------------------------------------------
# Wrapper: parameter folding/packing + pallas_call plumbing.
# ----------------------------------------------------------------------------
def _pick_bt(batch, hw, hpw):
    """Smallest divisor of `batch` giving lane-dense (multiple-of-128) blocks.

    Keeping bt small keeps the grid long, so both v7x TensorCores get work via
    dimension_semantics=("parallel",). Falls back to full-array blocks.
    """
    for bt in range(1, batch + 1):
        if batch % bt:
            continue
        if (bt * hw) % 128 == 0 and (bt * hpw) % 128 == 0:
            return bt
    return batch


def block_forward(x, params, compute_dtype=jnp.bfloat16):
    B, cin, H, W = x.shape
    cout = params["w1x1"].shape[0]
    HW = H * W
    HpW = (H + 2 * MAXP) * W
    bt = _pick_bt(B, HW, HpW)

    # --- fold BN (inference mode) into conv weights / biases ------------------
    def fold_conv_bn(w_koi, b_conv, g, beta, rm, rv):
        s = g / jnp.sqrt(rv + EPS)
        w_eff = w_koi * s[None, :, None]
        b_eff = (s * (b_conv - rm) + beta)[:, None]
        return w_eff, b_eff

    branch_w, branch_b = [], []
    for k in KS:
        we, be = fold_conv_bn(params[f"w{k}"], params[f"b{k}"], *params[f"bn_k{k}"])
        branch_w.append(we)
        branch_b.append(be)
    wsce, bsce = fold_conv_bn(params["w_sc"], params["b_sc"], *params["bn_sc"])

    g2, be2, rm2, rv2 = params["bn2"]
    s2 = (g2 / jnp.sqrt(rv2 + EPS))[:, None]
    t2 = (be2 - (g2 / jnp.sqrt(rv2 + EPS)) * rm2)[:, None]

    g3, be3, rm3, rv3 = params["bn_1x1"]
    s3 = g3 / jnp.sqrt(rv3 + EPS)
    w1e = s3[:, None] * params["w1x1"]
    b1e = (s3 * (params["b1x1"] - rm3) + be3)[:, None]

    # --- pack every MXU operand into 2 weight matrices + 1 f32 vector ---------
    # W_big rows: [k3; k5; k7; k9; shortcut]; branch-k tap s goes to column block
    # t = MAXP - (k-1)//2 + s (zero elsewhere) so one matmul covers all branches.
    wbig = jnp.zeros((5 * cout, NTAP * cin), jnp.float32)
    for bi, (k, we) in enumerate(zip(KS, branch_w)):
        p = (k - 1) // 2
        for s in range(k):
            t = MAXP - p + s
            wbig = wbig.at[bi * cout:(bi + 1) * cout,
                           t * cin:(t + 1) * cin].set(we[s])
    for s in range(3):                                  # shortcut (3,1) conv
        t = MAXP - 1 + s
        wbig = wbig.at[4 * cout:5 * cout, t * cin:(t + 1) * cin].set(wsce[s])

    wfc = jnp.concatenate([params["afc"], w1e], axis=0)            # [5*cout, cout]
    vvec = jnp.concatenate(branch_b + [bsce, s2, t2,
                                       params["bfc"][:, None], b1e],
                           axis=0).astype(jnp.float32)             # [12*cout, 1]

    wbig = wbig.astype(compute_dtype)
    wfc = wfc.astype(compute_dtype)

    # --- input layout: channels-major, batch packed into lanes ----------------
    xp = jnp.pad(x, ((0, 0), (0, 0), (MAXP, MAXP), (0, 0)))
    xp = xp.reshape(B, cin, HpW).transpose(1, 0, 2).reshape(cin, B * HpW)
    xp = xp.astype(compute_dtype)

    kernel = functools.partial(_block_kernel, cin=cin, cout=cout,
                               hw=HW, hpw=HpW, w=W, bt=bt)

    # NOTE: at realistic cout/cin the constant-index weight inputs could be given
    # pipeline_mode=pl.Buffered(1) (or hoisted into scratch) to avoid the default
    # double-buffered VMEM copies — relevant for v7x's 64 MiB VMEM per TC.
    out = pl.pallas_call(
        kernel,
        out_shape=jax.ShapeDtypeStruct((cout, B * HW), jnp.float32),
        grid=(B // bt,),
        in_specs=[
            pl.BlockSpec((cin, bt * HpW), lambda g: (0, g)),
            pl.BlockSpec((5 * cout, NTAP * cin), lambda g: (0, 0)),
            pl.BlockSpec((5 * cout, cout), lambda g: (0, 0)),
            pl.BlockSpec((12 * cout, 1), lambda g: (0, 0)),
        ],
        out_specs=pl.BlockSpec((cout, bt * HW), lambda g: (0, g)),
        compiler_params=pltpu.CompilerParams(dimension_semantics=("parallel",)),
    )(xp, wbig, wfc, vvec)

    return out.reshape(cout, B, H, W).transpose(1, 0, 2, 3)


# ----------------------------------------------------------------------------
# Pure-JAX reference (lax.conv based, f32) for correctness checking.
# ----------------------------------------------------------------------------
def reference_forward(x, params):
    def bn4(z, g, b, rm, rv):
        s = g / jnp.sqrt(rv + EPS)
        return z * s[None, :, None, None] + (b - s * rm)[None, :, None, None]

    def conv_branch(z, w_koi, bias, k):
        w = jnp.transpose(w_koi, (1, 2, 0))[..., None]  # [C_out, C_in, k, 1]
        p = (k - 1) // 2
        y = lax.conv_general_dilated(z, w, (1, 1), ((p, p), (0, 0)),
                                     dimension_numbers=("NCHW", "OIHW", "NCHW"))
        return y + bias[None, :, None, None]

    ys = []
    for k in KS:
        y = conv_branch(x, params[f"w{k}"], params[f"b{k}"], k)
        ys.append(bn4(y, *params[f"bn_k{k}"]))
    y_total = jnp.stack(ys, axis=1)                      # [B, 4, C, H, W]
    y_sum = jnp.sum(y_total, axis=1)
    gap = jnp.mean(y_sum, axis=(2, 3))                   # [B, C]
    attn = jax.nn.sigmoid(gap @ params["afc"].T + params["bfc"])
    B, C = gap.shape
    attn = attn.reshape(B, 4, C)[..., None, None]
    sk = jnp.sum(y_total * attn, axis=1)

    r = jax.nn.relu(bn4(sk, *params["bn2"]))
    main = (jnp.einsum("oc,bchw->bohw", params["w1x1"], r)
            + params["b1x1"][None, :, None, None])
    main = bn4(main, *params["bn_1x1"])
    sc = bn4(conv_branch(x, params["w_sc"], params["b_sc"], 3), *params["bn_sc"])
    return jax.nn.relu(main + sc)


# ----------------------------------------------------------------------------
# Deterministic parameter initialization (matches module __init__ shapes).
# ----------------------------------------------------------------------------
def init_params(key, cin, cout):
    keys = iter(jax.random.split(key, 64))

    def nrm(shape, scale=0.1):
        return scale * jax.random.normal(next(keys), shape, jnp.float32)

    def bn_params():
        g = 1.0 + 0.1 * jax.random.normal(next(keys), (cout,), jnp.float32)
        b = 0.1 * jax.random.normal(next(keys), (cout,), jnp.float32)
        rm = 0.1 * jax.random.normal(next(keys), (cout,), jnp.float32)
        rv = jax.random.uniform(next(keys), (cout,), jnp.float32, 0.5, 1.5)
        return (g, b, rm, rv)

    p = {}
    for k in KS:
        p[f"w{k}"] = nrm((k, cout, cin))      # Conv2d (k,1) kernel, taps leading
        p[f"b{k}"] = nrm((cout,))
        p[f"bn_k{k}"] = bn_params()
    p["bn2"] = bn_params()                    # BN after SKBlock
    p["w1x1"] = nrm((cout, cout))             # 1x1 conv
    p["b1x1"] = nrm((cout,))
    p["bn_1x1"] = bn_params()
    p["w_sc"] = nrm((3, cout, cin))           # shortcut (3,1) conv
    p["b_sc"] = nrm((cout,))
    p["bn_sc"] = bn_params()
    p["afc"] = nrm((4 * cout, cout))          # Linear(outC, 4*outC)
    p["bfc"] = nrm((4 * cout,))
    return p


if __name__ == "__main__":
    # stride = 1; HW = 16*8 = 128 so per-sample slabs are already lane-dense,
    # bt is picked as 2 -> grid length 2 (keeps both v7x TensorCores busy).
    B, CIN, COUT, SERIES, MODAL = 4, 4, 8, 16, 8
    key = jax.random.PRNGKey(0)
    kx, kp = jax.random.split(key)
    x = jax.random.normal(kx, (B, CIN, SERIES, MODAL), jnp.float32)
    params = init_params(kp, CIN, COUT)

    ref = reference_forward(x, params)

    # f32 path: tight check of the fused-matmul / attention / folding structure.
    out_f32 = jax.block_until_ready(block_forward(x, params, jnp.float32))
    assert out_f32.shape == (B, COUT, SERIES, MODAL)
    assert bool(jnp.allclose(out_f32, ref, atol=1e-3, rtol=1e-3)), "f32 mismatch"

    # bf16 matmul-input path (v6e/v7x perf config): f32 accumulation, looser tol.
    out_bf16 = jax.block_until_ready(block_forward(x, params, jnp.bfloat16))
    assert out_bf16.shape == (B, COUT, SERIES, MODAL)
    assert bool(jnp.allclose(out_bf16, ref, atol=3e-2, rtol=3e-2)), "bf16 mismatch"

    print("KERNEL_OK")
</pallas_src>

<mosaic_0001>
module attributes {stable_mosaic.version = 11 : i64} {
  func.func @_block_kernel(%arg0: i32, %arg1: memref<4x384xf32, #tpu.memory_space<vmem>>, %arg2: memref<40x36xf32, #tpu.memory_space<vmem>>, %arg3: memref<40x8xf32, #tpu.memory_space<vmem>>, %arg4: memref<96x1xf32, #tpu.memory_space<vmem>>, %arg5: memref<8x256xf32, #tpu.memory_space<vmem>>) attributes {dimension_semantics = [#tpu.dimension_semantics<parallel>], iteration_bounds = array<i64: 2>, scalar_prefetch = 0 : i64, scratch_operands = 0 : i64, tpu.core_type = #tpu.core_type<tc>, window_params = [{transform_indices = @transform_0, window_bounds = array<i64: 4, 384>}, {pipeline_mode = #tpu.pipeline_mode<synchronous>, transform_indices = @transform_1, window_bounds = array<i64: 40, 36>}, {pipeline_mode = #tpu.pipeline_mode<synchronous>, transform_indices = @transform_2, window_bounds = array<i64: 40, 8>}, {pipeline_mode = #tpu.pipeline_mode<synchronous>, transform_indices = @transform_3, window_bounds = array<i64: 96, 1>}, {transform_indices = @transform_4, window_bounds = array<i64: 8, 256>}]} {
    %c0 = arith.constant 0 : index
    %c0_0 = arith.constant 0 : index
    %0 = vector.load %arg1[%c0, %c0_0] : memref<4x384xf32, #tpu.memory_space<vmem>>, vector<4x128xf32>
    %c0_1 = arith.constant 0 : index
    %c192 = arith.constant 192 : index
    %1 = vector.load %arg1[%c0_1, %c192] : memref<4x384xf32, #tpu.memory_space<vmem>>, vector<4x128xf32>
    %2 = tpu.concatenate %0, %1 in 1 : vector<4x128xf32>, vector<4x128xf32> -> vector<4x256xf32>
    %c0_2 = arith.constant 0 : index
    %c8 = arith.constant 8 : index
    %3 = vector.load %arg1[%c0_2, %c8] : memref<4x384xf32, #tpu.memory_space<vmem>>, vector<4x128xf32>
    %c0_3 = arith.constant 0 : index
    %c200 = arith.constant 200 : index
    %4 = vector.load %arg1[%c0_3, %c200] : memref<4x384xf32, #tpu.memory_space<vmem>>, vector<4x128xf32>
    %5 = tpu.concatenate %3, %4 in 1 : vector<4x128xf32>, vector<4x128xf32> -> vector<4x256xf32>
    %c0_4 = arith.constant 0 : index
    %c16 = arith.constant 16 : index
    %6 = vector.load %arg1[%c0_4, %c16] : memref<4x384xf32, #tpu.memory_space<vmem>>, vector<4x128xf32>
    %c0_5 = arith.constant 0 : index
    %c208 = arith.constant 208 : index
    %7 = vector.load %arg1[%c0_5, %c208] : memref<4x384xf32, #tpu.memory_space<vmem>>, vector<4x128xf32>
    %8 = tpu.concatenate %6, %7 in 1 : vector<4x128xf32>, vector<4x128xf32> -> vector<4x256xf32>
    %c0_6 = arith.constant 0 : index
    %c24 = arith.constant 24 : index
    %9 = vector.load %arg1[%c0_6, %c24] : memref<4x384xf32, #tpu.memory_space<vmem>>, vector<4x128xf32>
    %c0_7 = arith.constant 0 : index
    %c216 = arith.constant 216 : index
    %10 = vector.load %arg1[%c0_7, %c216] : memref<4x384xf32, #tpu.memory_space<vmem>>, vector<4x128xf32>
    %11 = tpu.concatenate %9, %10 in 1 : vector<4x128xf32>, vector<4x128xf32> -> vector<4x256xf32>
    %c0_8 = arith.constant 0 : index
    %c32 = arith.constant 32 : index
    %12 = vector.load %arg1[%c0_8, %c32] : memref<4x384xf32, #tpu.memory_space<vmem>>, vector<4x128xf32>
    %c0_9 = arith.constant 0 : index
    %c224 = arith.constant 224 : index
    %13 = vector.load %arg1[%c0_9, %c224] : memref<4x384xf32, #tpu.memory_space<vmem>>, vector<4x128xf32>
    %14 = tpu.concatenate %12, %13 in 1 : vector<4x128xf32>, vector<4x128xf32> -> vector<4x256xf32>
    %c0_10 = arith.constant 0 : index
    %c40 = arith.constant 40 : index
    %15 = vector.load %arg1[%c0_10, %c40] : memref<4x384xf32, #tpu.memory_space<vmem>>, vector<4x128xf32>
    %c0_11 = arith.constant 0 : index
    %c232 = arith.constant 232 : index
    %16 = vector.load %arg1[%c0_11, %c232] : memref<4x384xf32, #tpu.memory_space<vmem>>, vector<4x128xf32>
    %17 = tpu.concatenate %15, %16 in 1 : vector<4x128xf32>, vector<4x128xf32> -> vector<4x256xf32>
    %c0_12 = arith.constant 0 : index
    %c48 = arith.constant 48 : index
    %18 = vector.load %arg1[%c0_12, %c48] : memref<4x384xf32, #tpu.memory_space<vmem>>, vector<4x128xf32>
    %c0_13 = arith.constant 0 : index
    %c240 = arith.constant 240 : index
    %19 = vector.load %arg1[%c0_13, %c240] : memref<4x384xf32, #tpu.memory_space<vmem>>, vector<4x128xf32>
    %20 = tpu.concatenate %18, %19 in 1 : vector<4x128xf32>, vector<4x128xf32> -> vector<4x256xf32>
    %c0_14 = arith.constant 0 : index
    %c56 = arith.constant 56 : index
    %21 = vector.load %arg1[%c0_14, %c56] : memref<4x384xf32, #tpu.memory_space<vmem>>, vector<4x128xf32>
    %c0_15 = arith.constant 0 : index
    %c248 = arith.constant 248 : index
    %22 = vector.load %arg1[%c0_15, %c248] : memref<4x384xf32, #tpu.memory_space<vmem>>, vector<4x128xf32>
    %23 = tpu.concatenate %21, %22 in 1 : vector<4x128xf32>, vector<4x128xf32> -> vector<4x256xf32>
    %c0_16 = arith.constant 0 : index
    %c64 = arith.constant 64 : index
    %24 = vector.load %arg1[%c0_16, %c64] : memref<4x384xf32, #tpu.memory_space<vmem>>, vector<4x128xf32>
    %c0_17 = arith.constant 0 : index
    %c256 = arith.constant 256 : index
    %25 = vector.load %arg1[%c0_17, %c256] : memref<4x384xf32, #tpu.memory_space<vmem>>, vector<4x128xf32>
    %26 = tpu.concatenate %24, %25 in 1 : vector<4x128xf32>, vector<4x128xf32> -> vector<4x256xf32>
    %27 = tpu.concatenate %2, %5, %8, %11, %14, %17, %20, %23, %26 in 0 : vector<4x256xf32>, vector<4x256xf32>, vector<4x256xf32>, vector<4x256xf32>, vector<4x256xf32>, vector<4x256xf32>, vector<4x256xf32>, vector<4x256xf32>, vector<4x256xf32> -> vector<36x256xf32>
    %c0_18 = arith.constant 0 : index
    %c0_19 = arith.constant 0 : index
    %28 = vector.load %arg2[%c0_18, %c0_19] : memref<40x36xf32, #tpu.memory_space<vmem>>, vector<40x36xf32>
    %cst = arith.constant dense<0.000000e+00> : vector<40x256xf32>
    %29 = tpu.matmul %28, %27, %cst {dimension_numbers = #tpu.dot_dimension_numbers<[1], [0], [0], [1], [0, 0, 1, 1], [], []>} : vector<40x36xf32>, vector<36x256xf32>, vector<40x256xf32> -> vector<40x256xf32>
    %c0_20 = arith.constant 0 : index
    %c0_21 = arith.constant 0 : index
    %30 = vector.load %arg4[%c0_20, %c0_21] : memref<96x1xf32, #tpu.memory_space<vmem>>, vector<40x1xf32>
    %31 = vector.broadcast %30 : vector<40x1xf32> to vector<40x256xf32>
    %32 = arith.addf %29, %31 : vector<40x256xf32>
    %33 = vector.extract_strided_slice %32 {offsets = [0, 0], sizes = [8, 256], strides = [1, 1]} : vector<40x256xf32> to vector<8x256xf32>
    %34 = vector.extract_strided_slice %32 {offsets = [8, 0], sizes = [8, 256], strides = [1, 1]} : vector<40x256xf32> to vector<8x256xf32>
    %35 = vector.extract_strided_slice %32 {offsets = [16, 0], sizes = [8, 256], strides = [1, 1]} : vector<40x256xf32> to vector<8x256xf32>
    %36 = vector.extract_strided_slice %32 {offsets = [24, 0], sizes = [8, 256], strides = [1, 1]} : vector<40x256xf32> to vector<8x256xf32>
    %37 = vector.extract_strided_slice %32 {offsets = [32, 0], sizes = [8, 256], strides = [1, 1]} : vector<40x256xf32> to vector<8x256xf32>
    %38 = arith.addf %33, %34 : vector<8x256xf32>
    %39 = arith.addf %38, %35 : vector<8x256xf32>
    %40 = arith.addf %39, %36 : vector<8x256xf32>
    %41 = vector.extract_strided_slice %40 {offsets = [0, 0], sizes = [8, 128], strides = [1, 1]} : vector<8x256xf32> to vector<8x128xf32>
    %cst_22 = arith.constant dense<0.000000e+00> : vector<8xf32>
    %42 = vector.multi_reduction <add>, %41, %cst_22 [1] : vector<8x128xf32> to vector<8xf32>
    %43 = vector.shape_cast %42 : vector<8xf32> to vector<8x1xf32>
    %cst_23 = arith.constant 1.280000e+02 : f32
    %44 = vector.broadcast %cst_23 : f32 to vector<8x1xf32>
    %45 = arith.divf %43, %44 : vector<8x1xf32>
    %46 = vector.extract_strided_slice %40 {offsets = [0, 128], sizes = [8, 128], strides = [1, 1]} : vector<8x256xf32> to vector<8x128xf32>
    %cst_24 = arith.constant dense<0.000000e+00> : vector<8xf32>
    %47 = vector.multi_reduction <add>, %46, %cst_24 [1] : vector<8x128xf32> to vector<8xf32>
    %48 = vector.shape_cast %47 : vector<8xf32> to vector<8x1xf32>
    %cst_25 = arith.constant 1.280000e+02 : f32
    %49 = vector.broadcast %cst_25 : f32 to vector<8x1xf32>
    %50 = arith.divf %48, %49 : vector<8x1xf32>
    %51 = tpu.concatenate %45, %50 in 1 : vector<8x1xf32>, vector<8x1xf32> -> vector<8x2xf32>
    %c0_26 = arith.constant 0 : index
    %c0_27 = arith.constant 0 : index
    %52 = vector.load %arg3[%c0_26, %c0_27] : memref<40x8xf32, #tpu.memory_space<vmem>>, vector<32x8xf32>
    %cst_28 = arith.constant dense<0.000000e+00> : vector<32x2xf32>
    %53 = tpu.matmul %52, %51, %cst_28 {dimension_numbers = #tpu.dot_dimension_numbers<[1], [0], [0], [1], [0, 0, 1, 1], [], []>} : vector<32x8xf32>, vector<8x2xf32>, vector<32x2xf32> -> vector<32x2xf32>
    %c56_29 = arith.constant 56 : index
    %c0_30 = arith.constant 0 : index
    %54 = vector.load %arg4[%c56_29, %c0_30] : memref<96x1xf32, #tpu.memory_space<vmem>>, vector<32x1xf32>
    %55 = vector.broadcast %54 : vector<32x1xf32> to vector<32x2xf32>
    %56 = arith.addf %53, %55 : vector<32x2xf32>
    %57 = arith.negf %56 : vector<32x2xf32>
    %58 = math.exp %57 : vector<32x2xf32>
    %cst_31 = arith.constant 1.000000e+00 : f32
    %59 = vector.broadcast %cst_31 : f32 to vector<32x2xf32>
    %60 = arith.addf %59, %58 : vector<32x2xf32>
    %61 = arith.divf %59, %60 : vector<32x2xf32>
    %62 = vector.extract_strided_slice %61 {offsets = [0, 0], sizes = [8, 2], strides = [1, 1]} : vector<32x2xf32> to vector<8x2xf32>
    %63 = vector.extract_strided_slice %62 {offsets = [0, 0], sizes = [8, 1], strides = [1, 1]} : vector<8x2xf32> to vector<8x1xf32>
    %64 = vector.shape_cast %63 : vector<8x1xf32> to vector<8x1xf32>
    %65 = vector.broadcast %64 : vector<8x1xf32> to vector<8x128xf32>
    %66 = vector.extract_strided_slice %62 {offsets = [0, 1], sizes = [8, 1], strides = [1, 1]} : vector<8x2xf32> to vector<8x1xf32>
    %67 = vector.shape_cast %66 : vector<8x1xf32> to vector<8x1xf32>
    %68 = vector.broadcast %67 : vector<8x1xf32> to vector<8x128xf32>
    %69 = tpu.concatenate %65, %68 in 1 : vector<8x128xf32>, vector<8x128xf32> -> vector<8x256xf32>
    %70 = arith.mulf %33, %69 : vector<8x256xf32>
    %71 = vector.extract_strided_slice %61 {offsets = [8, 0], sizes = [8, 2], strides = [1, 1]} : vector<32x2xf32> to vector<8x2xf32>
    %72 = vector.extract_strided_slice %71 {offsets = [0, 0], sizes = [8, 1], strides = [1, 1]} : vector<8x2xf32> to vector<8x1xf32>
    %73 = vector.shape_cast %72 : vector<8x1xf32> to vector<8x1xf32>
    %74 = vector.broadcast %73 : vector<8x1xf32> to vector<8x128xf32>
    %75 = vector.extract_strided_slice %71 {offsets = [0, 1], sizes = [8, 1], strides = [1, 1]} : vector<8x2xf32> to vector<8x1xf32>
    %76 = vector.shape_cast %75 : vector<8x1xf32> to vector<8x1xf32>
    %77 = vector.broadcast %76 : vector<8x1xf32> to vector<8x128xf32>
    %78 = tpu.concatenate %74, %77 in 1 : vector<8x128xf32>, vector<8x128xf32> -> vector<8x256xf32>
    %79 = arith.mulf %34, %78 : vector<8x256xf32>
    %80 = arith.addf %70, %79 : vector<8x256xf32>
    %81 = vector.extract_strided_slice %61 {offsets = [16, 0], sizes = [8, 2], strides = [1, 1]} : vector<32x2xf32> to vector<8x2xf32>
    %82 = vector.extract_strided_slice %81 {offsets = [0, 0], sizes = [8, 1], strides = [1, 1]} : vector<8x2xf32> to vector<8x1xf32>
    %83 = vector.shape_cast %82 : vector<8x1xf32> to vector<8x1xf32>
    %84 = vector.broadcast %83 : vector<8x1xf32> to vector<8x128xf32>
    %85 = vector.extract_strided_slice %81 {offsets = [0, 1], sizes = [8, 1], strides = [1, 1]} : vector<8x2xf32> to vector<8x1xf32>
    %86 = vector.shape_cast %85 : vector<8x1xf32> to vector<8x1xf32>
    %87 = vector.broadcast %86 : vector<8x1xf32> to vector<8x128xf32>
    %88 = tpu.concatenate %84, %87 in 1 : vector<8x128xf32>, vector<8x128xf32> -> vector<8x256xf32>
    %89 = arith.mulf %35, %88 : vector<8x256xf32>
    %90 = arith.addf %80, %89 : vector<8x256xf32>
    %91 = vector.extract_strided_slice %61 {offsets = [24, 0], sizes = [8, 2], strides = [1, 1]} : vector<32x2xf32> to vector<8x2xf32>
    %92 = vector.extract_strided_slice %91 {offsets = [0, 0], sizes = [8, 1], strides = [1, 1]} : vector<8x2xf32> to vector<8x1xf32>
    %93 = vector.shape_cast %92 : vector<8x1xf32> to vector<8x1xf32>
    %94 = vector.broadcast %93 : vector<8x1xf32> to vector<8x128xf32>
    %95 = vector.extract_strided_slice %91 {offsets = [0, 1], sizes = [8, 1], strides = [1, 1]} : vector<8x2xf32> to vector<8x1xf32>
    %96 = vector.shape_cast %95 : vector<8x1xf32> to vector<8x1xf32>
    %97 = vector.broadcast %96 : vector<8x1xf32> to vector<8x128xf32>
    %98 = tpu.concatenate %94, %97 in 1 : vector<8x128xf32>, vector<8x128xf32> -> vector<8x256xf32>
    %99 = arith.mulf %36, %98 : vector<8x256xf32>
    %100 = arith.addf %90, %99 : vector<8x256xf32>
    %c40_32 = arith.constant 40 : index
    %c0_33 = arith.constant 0 : index
    %101 = vector.load %arg4[%c40_32, %c0_33] : memref<96x1xf32, #tpu.memory_space<vmem>>, vector<8x1xf32>
    %102 = vector.broadcast %101 : vector<8x1xf32> to vector<8x256xf32>
    %103 = arith.mulf %100, %102 : vector<8x256xf32>
    %c48_34 = arith.constant 48 : index
    %c0_35 = arith.constant 0 : index
    %104 = vector.load %arg4[%c48_34, %c0_35] : memref<96x1xf32, #tpu.memory_space<vmem>>, vector<8x1xf32>
    %105 = vector.broadcast %104 : vector<8x1xf32> to vector<8x256xf32>
    %106 = arith.addf %103, %105 : vector<8x256xf32>
    %cst_36 = arith.constant 0.000000e+00 : f32
    %107 = vector.broadcast %cst_36 : f32 to vector<8x256xf32>
    %108 = arith.maximumf %106, %107 : vector<8x256xf32>
    %c32_37 = arith.constant 32 : index
    %c0_38 = arith.constant 0 : index
    %109 = vector.load %arg3[%c32_37, %c0_38] : memref<40x8xf32, #tpu.memory_space<vmem>>, vector<8x8xf32>
    %cst_39 = arith.constant dense<0.000000e+00> : vector<8x256xf32>
    %110 = tpu.matmul %109, %108, %cst_39 {dimension_numbers = #tpu.dot_dimension_numbers<[1], [0], [0], [1], [0, 0, 1, 1], [], []>} : vector<8x8xf32>, vector<8x256xf32>, vector<8x256xf32> -> vector<8x256xf32>
    %c88 = arith.constant 88 : index
    %c0_40 = arith.constant 0 : index
    %111 = vector.load %arg4[%c88, %c0_40] : memref<96x1xf32, #tpu.memory_space<vmem>>, vector<8x1xf32>
    %112 = vector.broadcast %111 : vector<8x1xf32> to vector<8x256xf32>
    %113 = arith.addf %110, %112 : vector<8x256xf32>
    %114 = arith.addf %113, %37 : vector<8x256xf32>
    %cst_41 = arith.constant 0.000000e+00 : f32
    %115 = vector.broadcast %cst_41 : f32 to vector<8x256xf32>
    %116 = arith.maximumf %114, %115 : vector<8x256xf32>
    %c0_42 = arith.constant 0 : index
    %c0_43 = arith.constant 0 : index
    %117 = vector.load %arg5[%c0_42, %c0_43] : memref<8x256xf32, #tpu.memory_space<vmem>>, vector<8x256xf32>
    tpu.vector_store %arg5[%c0_42, %c0_43], %116 {strides = array<i32>} : memref<8x256xf32, #tpu.memory_space<vmem>>, vector<8x256xf32>,
    return
  }
  func.func @transform_0(%arg0: i32) -> (i32, i32) {
    %c0_i32 = arith.constant 0 : i32
    %c0_i32_0 = arith.constant 0 : i32
    return %c0_i32, %arg0 : i32, i32
  }
  func.func @transform_1(%arg0: i32) -> (i32, i32) {
    %c0_i32 = arith.constant 0 : i32
    %c0_i32_0 = arith.constant 0 : i32
    %c0_i32_1 = arith.constant 0 : i32
    return %c0_i32, %c0_i32_0 : i32, i32
  }
  func.func @transform_2(%arg0: i32) -> (i32, i32) {
    %c0_i32 = arith.constant 0 : i32
    %c0_i32_0 = arith.constant 0 : i32
    %c0_i32_1 = arith.constant 0 : i32
    return %c0_i32, %c0_i32_0 : i32, i32
  }
  func.func @transform_3(%arg0: i32) -> (i32, i32) {
    %c0_i32 = arith.constant 0 : i32
    %c0_i32_0 = arith.constant 0 : i32
    %c0_i32_1 = arith.constant 0 : i32
    return %c0_i32, %c0_i32_0 : i32, i32
  }
  func.func @transform_4(%arg0: i32) -> (i32, i32) {
    %c0_i32 = arith.constant 0 : i32
    %c0_i32_0 = arith.constant 0 : i32
    return %c0_i32, %arg0 : i32, i32
  }
}

</mosaic_0001>

<bundles_post_ra>
// kernel: tpu_custom_call.1
= control target key start
LH: loop header
LB: loop body
LE: loop exit
PB: predicated region body
PF: predicated region fallthrough
CT: control target
= control target key end

     0   :  { %9 = vsyncpa [#allocation3], 0  ;;  %s1451_s0 = inlined_call_operand.vmem [shape: f32[4,768], index: 0, kind: input, shape index: {}]   ;;  %s1452_s1 = inlined_call_operand.vmem [shape: f32[40,36], index: 1, kind: input, shape index: {}]   ;;  %s1453_s2 = inlined_call_operand.vmem [shape: f32[40,8], index: 2, kind: input, shape index: {}]   ;;  %s1454_s3 = inlined_call_operand.vmem [shape: f32[96,1], index: 3, kind: input, shape index: {}]   ;;  %s1455_s4 = inlined_call_operand.hbm [shape: f32[8,512], index: 4, kind: output, shape index: {}]  }
   0x1   :  { %11 = vsyncpa [#allocation3 + $0x1], 0  ;;  %s1205_s15 = smov 0   ;;  %s1207_s16 = smov 0  }
   0x2   :  { %s1209_s17 = smov 0   ;;  %s1211_s18 = smov 0  }
   0x3 LB: > { %s1226_s19 = sadd.s32 4294967295, %s1159_s18   ;;  %s878_s20 = sadd.s32 4294967294, %s1159_s18   ;;  %s1159_s18 = sphi %s1211_s18, %s1461_s18   ;;  %s1155_s17 = sphi %s1209_s17, %s1460_s17   ;;  %s1151_s16 = sphi %s1207_s16, %s1459_s16   ;;  %s1147_s15 = sphi %s1205_s15, %s1458_s15  }
   0x4   : > { %s1230_s21 = sadd.s32 1, %s1159_s18   ;;  %s113_s22 = sadd.s32 1, %s1155_s17 }
   0x5   : > { %s110_s23 = ssub.s32 %s1159_s18, %s1230_s21  ;;  %p123_p0 = scmp.ne.s32.totalorder %s1155_s17, %s1151_s16 }
   0x6   : > { %p111_p1 = scmp.eq.s32.totalorder %s110_s23, 0  ;;  %p124_p2 = scmp.eq.s32.totalorder %s1226_s19, 1 }
   0x7   : > { %p129_p3 = scmp.ne.s32.totalorder %s1151_s16, %s1147_s15  ;;  %p130_p4 = scmp.eq.s32.totalorder %s878_s20, 1 }
   0x8   : > { %s1241_s24 = scalar_select %p111_p1, %s1155_s17, %s113_s22  }
   0x9   : > { %p1243_p5 = por %p124_p2, %p123_p0  ;;  %p1247_p6 = por %p130_p4, %p129_p3 }
   0xa   : > { %p881_p7 = scmp.ge.s32.totalorder %s1159_s18, 1  ;;  %p166_p8 = scmp.lt.s32.totalorder %s1159_s18, 3 }
   0xc   : > { %p167_p9 = pnand %p881_p7, %p166_p8 }
   0xd   : > { %s192_s27 = smul.u32 (!%p167_p9), 3, %s1226_s19  ;;  %s1161_s6 = smov (!%p167_p9), 120   ;;  %v1175_v6 = vmov (!%p167_p9), 0.0   ;;  %v339_v7 = vld [vmem:[%s1454_s3] sm:$0xff] (!%p167_p9)  ;;  %v1177_v8 = vmov (!%p167_p9), 0   ;;  %v340_v9 = vld [vmem:[%s1454_s3 + $0x8] sm:$0xff] (!%p167_p9) }
   0xe   : > { %170 = sbr.rel (%p167_p9) target bundleno = 1188 (0x4a4), region = 36  ;;  %s1162_s7 = smov (!%p167_p9), 56   ;;  %454 = vmatprep.mubr.f32.mxu0 (!%p167_p9), %v1175_v6  ;;  %472 = vmatprep.mubr.f32.mxu1 (!%p167_p9), %v1175_v6  ;;  %v341_v10 = vld [vmem:[%s1454_s3 + $0x10] sm:$0xff] (!%p167_p9)  ;;  %v342_v11 = vld [vmem:[%s1454_s3 + $0x18] sm:$0xff] (!%p167_p9)  ;;  %vm223_vm0 = vcmask (!%p167_p9), 457728   ;;  %vm249_vm1 = vcmask (!%p167_p9), 326656  }
   0xf   : > { %p193_p10 = scmp.lt.s32.totalorder (!%p167_p9), %s192_s27, 5  ;;  %s1163_s8 = smov (!%p167_p9), 104   ;;  %1071 = vset.pattern.permute.xlu1 (!%p167_p9), %v1177_v8  ;;  %1072 = vset.pattern.permute.xlu0 (!%p167_p9), %v1177_v8  ;;  %vm217_vm2 = vcmask (!%p167_p9), 982016   ;;  %vm243_vm3 = vcmask (!%p167_p9), 850944   ;;  %vm207_vm4 = vcmask (!%p167_p9), 523264   ;;  %vm236_vm5 = vcmask (!%p167_p9), 392192  }
  0x10   : > { %s1164_s9 = smov (!%p167_p9), 40   ;;  %s1165_s10 = smov (!%p167_p9), 48   ;;  %vm325_vm6 = vcmask (!%p167_p9), 1043456   ;;  %vm229_vm7 = vcmask (!%p167_p9), 916480   ;;  %vm275_vm8 = vcmask (!%p167_p9), 195584   ;;  %vm301_vm9 = vcmask (!%p167_p9), 64512  }
  0x11   : > { %s1166_s11 = smov (!%p167_p9), 64   ;;  %s1167_s12 = smov (!%p167_p9), 24   ;;  %vm262_vm10 = vcmask (!%p167_p9), 261120   ;;  %vm269_vm11 = vcmask (!%p167_p9), 719872   ;;  %vm295_vm12 = vcmask (!%p167_p9), 588800   ;;  %vm288_vm13 = vcmask (!%p167_p9), 130048  }
  0x12   : > { %s1168_s13 = smov (!%p167_p9), 112   ;;  %s1169_s14 = smov (!%p167_p9), 88   ;;  %vm255_vm14 = vcmask (!%p167_p9), 785408   ;;  %vm281_vm15 = vcmask (!%p167_p9), 654336  }
  0x13   : > { %s1170_s20 = smov (!%p167_p9), 8   ;;  %s1171_s22 = smov (!%p167_p9), 32  }
  0x14   : > { %s1172_s23 = smov (!%p167_p9), 72   ;;  %s1176_s29 = smov (!%p167_p9), 80  }
  0x15   : > { %s1463_s27 = smov (!%p193_p10, %s192_s27), 5 }
  0x16   : > { %s883_s28 = sshll.u32 %s1463_s27, 2  ;;  %s1173_s27 = smov 96  }
  0x17   : > { %s1257_s5 = scalar_lea.vmem %s1451_s0, %s883_s28  ;;  %s1174_s28 = smov 16  }
  0x18   : > { %v210_v0 = vld [vmem:[%s1257_s5] sm:$0xff] }
  0x19   : > { %v200_v1 = vld [vmem:[%s1257_s5 + $0x4] sm:$0xff]  ;;  %v212_v2 = vcombine.high %v210_v0, %v210_v0  ;;  %v199_v47 = vld [vmem:[%s1257_s5] sm:$0xf] }
  0x1a   : > { %v202_v3 = vcombine.high %v200_v1, %v200_v1 }
  0x1b   : > { %v1006_v4 = vpack.i.bf16 %v212_v2, %v210_v0 }
  0x1c   : > { %v996_v5 = vpack.i.bf16 %v202_v3, %v200_v1 }
  0x1d   : > { %1007 = vrot.lane.b32.xlu1 %v1006_v4, %s1161_s6 }
  0x1e   : > { %997 = vrot.lane.b32.xlu0 %v996_v5, %s1162_s7 }
  0x21   : > { %1012 = vrot.lane.b32.xlu1 %v1006_v4, %s1163_s8 }
  0x22   : > { %1002 = vrot.lane.b32.xlu0 %v996_v5, %s1164_s9 }
  0x25   : > { %1022 = vrot.lane.b32.xlu1 %v996_v5, %s1165_s10 }
  0x26   : > { %1017 = vrot.lane.b32.xlu0 %v996_v5, %s1166_s11 }
  0x29   : > { %1032 = vrot.lane.b32.xlu1 %v996_v5, %s1167_s12 }
  0x2a   : > { %1027 = vrot.lane.b32.xlu0 %v1006_v4, %s1168_s13 }
  0x2d   : > { %1042 = vrot.lane.b32.xlu1 %v1006_v4, %s1169_s14 }
  0x2e   : > { %1037 = vrot.lane.b32.xlu0 %v996_v5, %s1170_s20  ;;  %s189_s20 = sand.u32 1, %s1151_s16  }
  0x2f   : > { %s805_s6 = scalar_lea.sflag [#allocation3], %s189_s20 }
  0x31   : > { %1052 = vrot.lane.b32.xlu1 %v996_v5, %s1171_s22  ;;  %s882_s22 = sshll.u32 %s189_s20, 4 }
  0x32   : > { %1047 = vrot.lane.b32.xlu0 %v1006_v4, %s1172_s23  ;;  %s191_s23 = scalar_lea.vmem [#allocation2], %s882_s22 }
  0x35   : > { %1062 = vrot.lane.b32.xlu1 %v1006_v4, %s1173_s27  ;;  %s819_s27 = sshll.u32 %s191_s23, 4  ;;  %s1411_s27 = int_to_ptr.vmem [resolvable:$true] %s819_s27 }
  0x36   : > { %1057 = vrot.lane.b32.xlu0 %v996_v5, %s1174_s28  ;;  %s1097_s7 = scalar_lea.vmem %s1411_s27, 256 }
  0x37   : > { %p1098_p11 = scmp.ne.s32.totalorder %s1411_s27, %s1097_s7 }
  0x39   : > { %304 = vrot.lane.b32.xlu1 %v210_v0, %s1166_s11  ;;  %p1099_p12 = pnand %p1098_p11, %p1243_p5 }
  0x3a   : > { %1067 = vrot.lane.b32.xlu0 %v1006_v4, %s1176_s29 }
  0x3b   : > { %p1100_p13 = pneg %p1099_p12 }
  0x3d   : > { %346 = vperm.xlu1 %1071, %v339_v7  }
  0x3e   : > { %306 = vrot.lane.b32.xlu0 %v212_v2, %s1166_s11 }
  0x41   : > { %356 = vperm.xlu1 %1071, %v341_v10  }
  0x42   : > { %351 = vperm.xlu0 %1072, %v340_v9  }
  0x45   : > { %361 = vperm.xlu1 %1071, %v342_v11  }
  0x8f   : > { %v1008_v12 = vpop.permute.xlu1 %1007 }
  0x90   : > { %v998_v13 = vpop.permute.xlu0 %997  ;;  %v1010_v20 = vunpack.i.h.bf16 %v1008_v12  ;;  %v1009_v21 = vunpack.i.l.bf16 %v1008_v12 }
  0x91   : > { %v1000_v14 = vunpack.i.h.bf16 %v998_v13  ;;  %v999_v15 = vunpack.i.l.bf16 %v998_v13 }
  0x92   : > { %v218_v32 = vsel %vm217_vm2, %v1009_v21, %v1010_v20 }
  0x93   : > { %v1013_v16 = vpop.permute.xlu1 %1012  ;;  %v224_v22 = vsel %vm223_vm0, %v999_v15, %v1000_v14  ;;  %v309_v42 = vrot.slane %v218_v32, 4  ;;  %vm369_vm0 = vcmask 293888  }
  0x94   : > { %v1003_v17 = vpop.permute.xlu0 %1002  ;;  %v1015_v23 = vunpack.i.h.bf16 %v1013_v16  ;;  %v1014_v24 = vunpack.i.l.bf16 %v1013_v16  ;;  %v310_v33 = vrot.slane %v224_v22, 4 }
  0x95   : > { %v1005_v18 = vunpack.i.h.bf16 %v1003_v17  ;;  %v1004_v19 = vunpack.i.l.bf16 %v1003_v17  ;;  %v326_v52 = vsel %vm325_vm6, %v199_v47, %v309_v42 }
  0x96   : > { %v244_v35 = vsel %vm243_vm3, %v1014_v24, %v1015_v23 }
  0x97   : > { %v250_v25 = vsel %vm249_vm1, %v1004_v19, %v1005_v18  ;;  %v1023_v26 = vpop.permute.xlu1 %1022  ;;  %v313_v45 = vrot.slane %v244_v35, 4  ;;  %v334_v35 = vld [vmem:[%s1452_s1] sm:$0xff]  ;;  %vm498_vm1 = vcmask 7168  }
  0x98   : > { %v1018_v27 = vpop.permute.xlu0 %1017  ;;  %v1025_v28 = vunpack.i.h.bf16 %v1023_v26  ;;  %v1024_v29 = vunpack.i.l.bf16 %v1023_v26  ;;  %v314_v34 = vrot.slane %v250_v25, 4 }
  0x99   : > { %v1020_v30 = vunpack.i.h.bf16 %v1018_v27  ;;  %v1019_v31 = vunpack.i.l.bf16 %v1018_v27 }
  0x9a   : > { %v237_v37 = vsel %vm236_vm5, %v1024_v29, %v1025_v28 }
  0x9b   : > { %v208_v36 = vsel %vm207_vm4, %v1019_v31, %v1020_v30  ;;  %v1033_v38 = vpop.permute.xlu1 %1032  ;;  %v329_v41 = vsel %vm325_vm6, %v237_v37, %v314_v34  ;;  %v335_v37 = vld [vmem:[%s1452_s1 + $0x8] sm:$0xff] }
  0x9c   : > { %v1028_v39 = vpop.permute.xlu0 %1027  ;;  %v327_v40 = vsel %vm325_vm6, %v208_v36, %v310_v33  ;;  %v1035_v53 = vunpack.i.h.bf16 %v1033_v38  ;;  %v1034_v54 = vunpack.i.l.bf16 %v1033_v38  ;;  %v303_v33 = vld [vmem:[%s1257_s5 + $0x8] sm:$0xf]  ;;  %v337_v36 = vld [vmem:[%s1452_s1 + $0x18] sm:$0xff]  ;;  %v336_v38 = vld [vmem:[%s1452_s1 + $0x10] sm:$0xff]  ;;  %s905_s5 = sshll.u32 %s1226_s19, 8  ;;  %s1179_s19 = smov [#allocation2]  }
  0x9d   : > { %v1030_v43 = vunpack.i.h.bf16 %v1028_v39  ;;  %v1029_v44 = vunpack.i.l.bf16 %v1028_v39  ;;  %v919_v46 = vpack.c.bf16 %v329_v41, %v327_v40  ;;  %s1409_s30 = scalar_lea.hbm %s1455_s4, %s905_s5  ;;  %s1101_s8 = sshll.u32 %s1179_s19, 4  ;;  %s1102_s8 = int_to_ptr.vmem [resolvable:$false] %s1101_s8 }
  0x9e   : > { %v276_v62 = vsel %vm275_vm8, %v1034_v54, %v1035_v53  ;;  %s1103_s9 = scalar_lea.vmem %s1102_s8, 512  ;;  %p1104_p0 = scmp.lt.s32.totalorder %s1411_s27, %s1102_s8 }
  0x9f   : > { %v230_v48 = vsel %vm229_vm7, %v1029_v44, %v1030_v43  ;;  %920 = vmatprep.subr.bf16.mxu0 %v919_v46  ;;  %927 = vmatprep.subr.bf16.mxu1 %v919_v46  ;;  %v1043_v49 = vpop.permute.xlu1 %1042  ;;  %v318_v13 = vrot.slane %v276_v62, 4  ;;  %p1105_p1 = scmp.lt.s32.totalorder %s1103_s9, %s1097_s7 }
  0xa0   : > { %v1038_v50 = vpop.permute.xlu0 %1037  ;;  %v328_v51 = vsel %vm325_vm6, %v230_v48, %v313_v45  ;;  %v1045_v63 = vunpack.i.h.bf16 %v1043_v49  ;;  %v1044_v0 = vunpack.i.l.bf16 %v1043_v49 }
  0xa1   : > { %v921_v55 = vpack.c.bf16 %v328_v51, %v326_v52  ;;  %v1040_v56 = vunpack.i.h.bf16 %v1038_v50  ;;  %v1039_v57 = vunpack.i.l.bf16 %v1038_v50  ;;  %p1106_p2 = por %p1105_p1, %p1104_p0 }
  0xa2   : > { %v270_v15 = vsel %vm269_vm11, %v1044_v0, %v1045_v63  ;;  %v505_v0 = vld [vmem:[%s1454_s3 + $0x40] sm:$0xff] }
  0xa3   : > { %922 = vmatpush1.bf16.msra.mxu0 %v921_v55  ;;  %930 = vmatpush1.bf16.msra.mxu1 %v921_v55  ;;  %v1053_v58 = vpop.permute.xlu1 %1052  ;;  %v302_v1 = vsel %vm301_vm9, %v1039_v57, %v1040_v56  ;;  %v317_v25 = vrot.slane %v270_v15, 4  ;;  %v503_v15 = vld [vmem:[%s1453_s2 + $0x18] sm:$0xff]  ;;  %p1107_p3 = pnand %p1106_p2, %p1100_p13 }
  0xa4   : > { %v1048_v59 = vpop.permute.xlu0 %1047  ;;  %v1055_v60 = vunpack.i.h.bf16 %v1053_v58  ;;  %v1054_v61 = vunpack.i.l.bf16 %v1053_v58  ;;  %v322_v14 = vrot.slane %v302_v1, 4  ;;  %v338_v1 = vld [vmem:[%s1452_s1 + $0x20] sm:$0xff] }
  0xa5   : > { %v1050_v2 = vunpack.i.h.bf16 %v1048_v59  ;;  %v1049_v3 = vunpack.i.l.bf16 %v1048_v59 }
  0xa6   : > { %v263_v4 = vsel %vm262_vm10, %v1054_v61, %v1055_v60 }
  0xa7   : > { %v1063_v5 = vpop.permute.xlu1 %1062  ;;  %v296_v16 = vsel %vm295_vm12, %v1049_v3, %v1050_v2  ;;  %v331_v19 = vsel %vm325_vm6, %v263_v4, %v318_v13  ;;  %v507_v2 = vld [vmem:[%s1454_s3 + $0x50] sm:$0xff]  ;;  %v504_v3 = vld [vmem:[%s1454_s3 + $0x38] sm:$0xff]  ;;  %v500_v4 = vld [vmem:[%s1453_s2] sm:$0xff] }
  0xa8   : > { %v1058_v7 = vpop.permute.xlu0 %1057  ;;  %v1065_v9 = vunpack.i.h.bf16 %v1063_v5  ;;  %v1064_v10 = vunpack.i.l.bf16 %v1063_v5  ;;  %v321_v26 = vrot.slane %v296_v16, 4  ;;  %v506_v5 = vld [vmem:[%s1454_s3 + $0x48] sm:$0xff] }
  0xa9   : > { %v1060_v11 = vunpack.i.h.bf16 %v1058_v7  ;;  %v1059_v12 = vunpack.i.l.bf16 %v1058_v7  ;;  %v501_v13 = vld [vmem:[%s1453_s2 + $0x8] sm:$0xff] }
  0xaa   : > { %v256_v21 = vsel %vm255_vm14, %v1064_v10, %v1065_v9 }
  0xab   : > { %v289_v17 = vsel %vm288_vm13, %v1059_v12, %v1060_v11  ;;  %v330_v28 = vsel %vm325_vm6, %v256_v21, %v317_v25  ;;  %v305_v31 = vpop.permute.xlu1 %304 }
  0xac   : > { %v1068_v18 = vpop.permute.xlu0 %1067  ;;  %v333_v20 = vsel %vm325_vm6, %v289_v17, %v322_v14  ;;  %v502_v14 = vld [vmem:[%s1453_s2 + $0x10] sm:$0xff] }
  0xad   : > { %v1070_v22 = vunpack.i.h.bf16 %v1068_v18  ;;  %v1069_v23 = vunpack.i.l.bf16 %v1068_v18  ;;  %v923_v24 = vpack.c.bf16 %v333_v20, %v331_v19  ;;  %v1178_v18 = vmov 1  }
  0xaf   : > { %v282_v27 = vsel %vm281_vm15, %v1069_v23, %v1070_v22  ;;  %924 = vmatprep.subr.bf16.mxu0 %v923_v24  ;;  %928 = vmatprep.subr.bf16.mxu1 %v923_v24 }
  0xb0   : > { %v332_v29 = vsel %vm325_vm6, %v282_v27, %v321_v26  ;;  %v307_v32 = vpop.permute.xlu0 %306 }
  0xb1   : > { %v925_v30 = vpack.c.bf16 %v332_v29, %v330_v28  ;;  %v308_v34 = vsel %vm207_vm4, %v305_v31, %v307_v32 }
  0xb3   : > { %926 = vmatpush1.bf16.msra.mxu0 %v925_v30  ;;  %931 = vmatpush1.bf16.msra.mxu1 %v925_v30 }
  0xb4   : > { %884 = vmatprep.subr.msk.mxu0 %vm325_vm6, %v303_v33  ;;  %929 = vmatprep.subr.msk.mxu1 %vm325_vm6, %v303_v33 }
  0xb7   : > { %885 = vmatpush1.msk.msra.mxu0 %vm325_vm6, %v308_v34  ;;  %932 = vmatpush1.msk.msra.mxu1 %vm325_vm6, %v308_v34 }
  0xb8   : > { %886 = vmatmul.mubr.msk.f32.vlgmr.msra.gmra.mrb[0].mxu0 %vm369_vm0, %v334_v35  ;;  %889 = vmatmul.mubr.msk.f32.vlgmr.msra.gmra.mrb[0].mxu1 %vm369_vm0, %v337_v36 }
  0xb9   : > { %460 = vmatprep.mubr.f32.mxu0 %v1175_v6  ;;  %478 = vmatprep.mubr.f32.mxu1 %v1175_v6 }
  0xbc   : > { %887 = vmatmul.mubr.msk.f32.gmra.mrb[2].mxu0 %vm369_vm0, %v335_v37  ;;  %v347_v39 = vpop.permute.xlu1 %346  ;;  %890 = vmatmul.mubr.msk.f32.gmra.mrb[2].mxu1 %vm369_vm0, %v338_v1 }
  0xbd   : > { %466 = vmatprep.mubr.f32.mxu0 %v1175_v6  ;;  %913 = vmatprep.mubr.msk.f32.mxu1 %vm301_vm9, %v500_v4 }
  0xc0   : > { %888 = vmatmul.mubr.msk.f32.gmra.mrb[4].mxu0 %vm369_vm0, %v336_v38  ;;  %v357_v44 = vpop.permute.xlu1 %356 }
  0xc1   : > { %791 = vmatprep.mubr.f32.mxu0 %v1175_v6  ;;  %v352_v45 = vpop.permute.xlu0 %351 }
  0xc4   : > { %v362_v52 = vpop.permute.xlu1 %361 }
 0x18b   : > { %v456_v40 = vpop.f32.mrb[0].mxu0  ;;  %v474_v41 = vpop.f32.mrb[0].mxu1 }
 0x18c   : > { %v458_v42 = vpop.f32.mrb[1].mxu0  ;;  %v476_v43 = vpop.f32.mrb[1].mxu1  ;;  %v1319_v50 = vadd.f32 %v456_v40, %v347_v39  ;;  %v1331_v58 = vadd.f32 %v474_v41, %v362_v52 }
 0x18d   : > { %v1321_v51 = vadd.f32 %v458_v42, %v347_v39  ;;  %v1334_v60 = vadd.f32 %v476_v43, %v362_v52  ;;  %v699_v52 = vld [vmem:[%s1454_s3 + $0x28] sm:$0xff] }
 0x18f   : > { %v462_v46 = vpop.f32.mrb[2].mxu0  ;;  %v1371_v16 = vpop.f32.mrb[2].mxu1 }
 0x190   : > { %v1315_v47 = vadd.f32 %v462_v46, %v352_v45  ;;  %v464_v48 = vpop.f32.mrb[3].mxu0  ;;  %v1373_v17 = vpop.f32.mrb[3].mxu1 }
 0x191   : > { %v1317_v49 = vadd.f32 %v464_v48, %v352_v45  ;;  %v707_v48 = vld [vmem:[%s1454_s3 + $0x30] sm:$0xff] }
 0x192   : > { %v485_v6 = vadd.f32 %v1315_v47, %v1319_v50 }
 0x193   : > { %v468_v53 = vpop.f32.mrb[4].mxu0  ;;  %v486_v56 = vadd.f32 %v1317_v49, %v1321_v51 }
 0x194   : > { %v1325_v54 = vadd.f32 %v468_v53, %v357_v44  ;;  %v470_v55 = vpop.f32.mrb[5].mxu0  ;;  %v343_v53 = vld [vmem:[%s1454_s3 + $0x20] sm:$0xff] }
 0x195   : > { %v1329_v57 = vadd.f32 %v470_v55, %v357_v44 }
 0x196   : > { %v487_v59 = vadd.f32 %v485_v6, %v1325_v54  ;;  %v718_v6 = vld [vmem:[%s1454_s3 + $0x58] sm:$0xff] }
 0x197   : > { %v488_v61 = vadd.f32 %v486_v56, %v1329_v57 }
 0x198   : > { %v489_v62 = vadd.f32 %v487_v59, %v1331_v58 }
 0x199   : > { %v490_v63 = vadd.f32 %v488_v61, %v1334_v60 }
 0x19a   : > { %491 = vadd.xlane.f32.xlu0 %v489_v62 }
 0x19b   : > { %495 = vadd.xlane.f32.xlu1 %v490_v63 }
 0x1ac   : > { %515 = vperm.xlu1 %1071, %v505_v0  }
 0x1b0   : > { %525 = vperm.xlu1 %1071, %v507_v2   ;;  %510 = vperm.xlu0 %1072, %v504_v3  }
 0x1b4   : > { %520 = vperm.xlu0 %1072, %v506_v5   ;;  %1073 = vset.pattern.permute.xlu1 %v1178_v18 }
 0x227   : > { %v492_v7 = vpop.xlane.xlu0 %491 }
 0x228   : > { %v494_v9 = vmul.f32 0.0078125, %v492_v7  ;;  %v496_v10 = vpop.xlane.xlu1 %495 }
 0x229   : > { %v497_v11 = vmul.f32 0.0078125, %v496_v10 }
 0x22b   : > { %v499_v12 = vsel %vm498_vm1, %v494_v9, %v497_v11 }
 0x22c   : > { %911 = vmatprep.subr.mxu1 %v499_v12  ;;  %v516_v19 = vpop.permute.xlu1 %515 }
 0x22d   : > { %912 = vmatpush3.msra.mxu1 %v499_v12 }
 0x22e   : > { %914 = vmatmul.mubr.msk.f32.vlgmr.msra.gmra.mrb[4].mxu1 %vm301_vm9, %v501_v13 }
 0x22f   : > { %916 = vmatprep.mubr.msk.f32.mxu1 %vm301_vm9, %v502_v14  ;;  %v511_v20 = vpop.permute.xlu0 %510 }
 0x230   : > { %v526_v26 = vpop.permute.xlu1 %525 }
 0x232   : > { %917 = vmatmul.mubr.msk.f32.gmra.mrb[6].mxu1 %vm301_vm9, %v503_v15 }
 0x233   : > { %v521_v29 = vpop.permute.xlu0 %520 }
 0x301   : > { %v915_v21 = vpop.f32.mrb[4].mxu1 }
 0x302   : > { %v612_v22 = vadd.f32 %v915_v21, %v516_v19  ;;  %v606_v23 = vpop.f32.mrb[5].mxu1  ;;  %v717_v21 = vld [vmem:[%s1453_s2 + $0x20] sm:$0xff] }
 0x303   : > { %v607_v24 = vadd.f32 %v606_v23, %v511_v20 }
 0x304   : > { %v896_v25 = vmul.f32 -1.442695, %v612_v22 }
 0x305   : > { %v895_v27 = vmul.f32 -1.442695, %v607_v24  ;;  %v918_v28 = vpop.f32.mrb[6].mxu1 }
 0x306   : > { %1081 = vpow2.f32 %v896_v25  ;;  %v622_v30 = vadd.f32 %v918_v28, %v526_v26  ;;  %v616_v31 = vpop.f32.mrb[7].mxu1 }
 0x307   : > { %1083 = vpow2.f32 %v895_v27  ;;  %v617_v32 = vadd.f32 %v616_v31, %v521_v29 }
 0x308   : > { %v898_v33 = vmul.f32 -1.442695, %v622_v30 }
 0x309   : > { %v897_v34 = vmul.f32 -1.442695, %v617_v32 }
 0x30a   : > { %1085 = vpow2.f32 %v898_v33 }
 0x30b   : > { %1087 = vpow2.f32 %v897_v34 }
 0x310   : > { %v1082_v35 = vpop.eup %1081 }
 0x311   : > { %v1084_v36 = vpop.eup %1083  ;;  %v638_v37 = vadd.f32 1.0, %v1082_v35 }
 0x312   : > { %v637_v38 = vadd.f32 1.0, %v1084_v36 }
 0x313   : > { %1089 = vrcp.f32 %v638_v37 }
 0x314   : > { %v1086_v39 = vpop.eup %1085  ;;  %1091 = vrcp.f32 %v637_v38 }
 0x315   : > { %v1088_v40 = vpop.eup %1087  ;;  %v640_v41 = vadd.f32 1.0, %v1086_v39 }
 0x316   : > { %v639_v42 = vadd.f32 1.0, %v1088_v40 }
 0x317   : > { %1093 = vrcp.f32 %v640_v41 }
 0x318   : > { %1095 = vrcp.f32 %v639_v42 }
 0x31d   : > { %v1090_v43 = vpop.eup %1089 }
 0x31e   : > { %662 = vperm.xlu0 %1072, %v1090_v43   ;;  %666 = vperm.xlu1 %1073, %v1090_v43   ;;  %v1092_v44 = vpop.eup %1091 }
 0x321   : > { %v1094_v45 = vpop.eup %1093 }
 0x322   : > { %1074 = vset.pattern.permute.xlu0 %v1178_v18  ;;  %1075 = vset.pattern.permute.xlu1 %v1177_v8  ;;  %v1096_v46 = vpop.eup %1095 }
 0x323   : > { %651 = vperm.xlu1 %1075, %v1092_v44   ;;  %655 = vperm.xlu0 %1074, %v1092_v44  }
 0x327   : > { %1076 = vset.pattern.permute.xlu1 %v1178_v18  ;;  %692 = vperm.xlu0 %1074, %v1094_v45  }
 0x328   : > { %679 = vperm.xlu1 %1076, %v1096_v46  }
 0x32b   : > { %1078 = vset.pattern.permute.xlu0 %v1177_v8 }
 0x32c   : > { %1077 = vset.pattern.permute.xlu1 %v1177_v8  ;;  %710 = vperm.xlu0 %1078, %v707_v48  }
 0x32d   : > { %675 = vperm.xlu1 %1077, %v1096_v46  }
 0x331   : > { %688 = vperm.xlu1 %1077, %v1094_v45  }
 0x335   : > { %702 = vperm.xlu1 %1077, %v699_v52  }
 0x339   : > { %366 = vperm.xlu1 %1077, %v343_v53  }
 0x33d   : > { %721 = vperm.xlu1 %1077, %v718_v6  }
 0x39d   : > { %v667_v55 = vpop.permute.xlu1 %666  ;;  %v663_v8 = vpop.permute.xlu0 %662 }
 0x39e   : > { %v670_v63 = vmul.f32 %v667_v55, %v1317_v49  ;;  %v669_v3 = vmul.f32 %v663_v8, %v1315_v47 }
 0x3a2   : > { %v652_v56 = vpop.permute.xlu1 %651  ;;  %v656_v59 = vpop.permute.xlu0 %655 }
 0x3a3   : > { %v659_v62 = vmul.f32 %v656_v59, %v1321_v51  ;;  %v658_v0 = vmul.f32 %v652_v56, %v1319_v50 }
 0x3a5   : > { %v672_v4 = vadd.f32 %v670_v63, %v659_v62  ;;  %v671_v9 = vadd.f32 %v669_v3, %v658_v0 }
 0x3a6   : > { %v693_v7 = vpop.permute.xlu0 %692 }
 0x3a7   : > { %v680_v61 = vpop.permute.xlu1 %679  ;;  %v696_v12 = vmul.f32 %v693_v7, %v1334_v60 }
 0x3a8   : > { %v683_v1 = vmul.f32 %v680_v61, %v1329_v57 }
 0x3aa   : > { %v685_v10 = vadd.f32 %v683_v1, %v672_v4 }
 0x3ab   : > { %v711_v57 = vpop.permute.xlu0 %710 }
 0x3ac   : > { %v676_v2 = vpop.permute.xlu1 %675  ;;  %v698_v50 = vadd.f32 %v696_v12, %v685_v10 }
 0x3ad   : > { %v682_v5 = vmul.f32 %v676_v2, %v1325_v54 }
 0x3af   : > { %v684_v13 = vadd.f32 %v682_v5, %v671_v9 }
 0x3b0   : > { %v689_v11 = vpop.permute.xlu1 %688 }
 0x3b1   : > { %v695_v51 = vmul.f32 %v689_v11, %v1331_v58 }
 0x3b3   : > { %v697_v49 = vadd.f32 %v695_v51, %v684_v13 }
 0x3b4   : > { %v703_v14 = vpop.permute.xlu1 %702 }
 0x3b5   : > { %v705_v15 = vmul.f32 %v703_v14, %v697_v49  ;;  %v706_v18 = vmul.f32 %v703_v14, %v698_v50 }
 0x3b7   : > { %v713_v47 = vadd.f32 %v711_v57, %v705_v15  ;;  %v714_v19 = vadd.f32 %v711_v57, %v706_v18 }
 0x3b8   : > { %v367_v58 = vpop.permute.xlu1 %366 }
 0x3b9   : > { %v715_v20 = vmax.f32 %v713_v47, 0.0  ;;  %v716_v54 = vmax.f32 %v714_v19, 0.0  ;;  %v481_v22 = vadd.f32 %v1371_v16, %v367_v58  ;;  %v483_v23 = vadd.f32 %v1373_v17, %v367_v58 }
 0x3bb   : > { %727 = vmatprep.subr.mxu0 %v716_v54 }
 0x3bc   : > { %728 = vmatpush1.msra.mxu0 %v715_v20  ;;  %v722_v60 = vpop.permute.xlu1 %721 }
 0x3bd   : > { %899 = vmatmul.mubr.msk.f32.vlgmr.msra.gmra.mrb[6].mxu0 %vm301_vm9, %v717_v21  ;;  %v934_v24 = vadd.f32 %v722_v60, %v481_v22  ;;  %v937_v25 = vadd.f32 %v722_v60, %v483_v23 }
 0x490   : > { %v793_v26 = vpop.f32.mrb[6].mxu0 }
 0x491   : > { %v935_v27 = vadd.f32 %v934_v24, %v793_v26  ;;  %v795_v28 = vpop.f32.mrb[7].mxu0 }
 0x492   : > { %v938_v29 = vadd.f32 %v937_v25, %v795_v28 }
 0x493   : > { %v800_v30 = vmax.f32 %v935_v27, 0.0 }
 0x494   : > { %v801_v31 = vmax.f32 %v938_v29, 0.0 }
 0x495   : > { %802 = vst [vmem:[%s191_s23] sm:$0xff] %v800_v30 }
 0x496   : > { %803 = vst [vmem:[%s191_s23 + $0x8] sm:$0xff] %v801_v31 }
 0x497   : > { %1110 = shalt.err (!%p1107_p3)
}
 0x498   : > { %s1111_s10 = scalar_lea.hbm %s1409_s30, 256  ;;  %s1115_s13 = scalar_lea.hbm %s1455_s4, 512 }
 0x499   : > { %p1112_p4 = scmp.ne.s32.totalorder %s1409_s30, %s1111_s10  ;;  %p1116_p9 = scmp.lt.u32.totalorder %s1409_s30, %s1455_s4 }
 0x49a   : > { %p1117_p10 = scmp.lt.u32.totalorder %s1115_s13, %s1111_s10  ;;  %p1119_p12 = scmp.lt.u32.totalorder %s1111_s10, %s1409_s30 }
 0x49b   : > { %p1113_p7 = pnand %p1112_p4, %p1243_p5 }
 0x49c   : > { %p1118_p11 = por %p1117_p10, %p1116_p9 }
 0x49d   : > { %p1114_p8 = pneg %p1113_p7 }
 0x49e   : > { %p1120_p13 = por %p1119_p12, %p1118_p11 }
 0x4a0   : > { %p1121_p0 = pnand %p1120_p13, %p1114_p8 }
 0x4a2   : > { %1124 = shalt.err (!%p1121_p0)
}
 0x4a3   : > { %939 = dma.vmem_to_hbm [thread:$0]  (%p1243_p5), %s1411_s27, 256, %s1409_s30, %s805_s6  }
 0x4a4 PF: > { %p945_p1 = scmp.ge.s32.totalorder %s1159_s18, 2  ;;  %s831_s22 = sand.u32 1, %s1147_s15  }
 0x4a5   : > { %s832_s5 = scalar_lea.sflag [#allocation3], %s831_s22 }
 0x4a6   : > { %p942_p2 = pnand %p945_p1, %p1247_p6 }
 0x4a8   : > { %1142 = dma.done.wait (!%p942_p2), %s832_s5, 256  }
 0x4a9   : > { %1144 = vsyncadd (!%p942_p2), %s832_s5, 4294967040  ;;  %p14_p3 = scmp.ge.s32.totalorder %s1230_s21, 4   ;;  %s1458_s15 = smov %s1151_s16 }
 0x4aa   : > { %s1459_s16 = smov %s1155_s17  ;;  %s1460_s17 = smov %s1241_s24 }
 0x4ab   : > { %s1461_s18 = smov %s1230_s21  ;;  %16 = sbr.rel (!%p14_p3) target bundleno = 3 (0x3), region = 71 }
 0x4b2   :  { %837 = vsyncpa [#allocation3], 1 }
 0x4b3   :  { %839 = vsyncpa [#allocation3 + $0x1], 1 }

</bundles_post_ra>
